<compile_context>
chip_gen: v5e
topology: v5e:2x2
jax: 0.10.0
libtpu: 0.0.40
codegen_flags: <defaults>
</compile_context>

<pallas_src>
import jax
import jax.numpy as jnp
from jax.experimental import pallas as pl
from jax.experimental.pallas import tpu as pltpu

_BN_EPS = 1e-5


def _round_up(x, m):
    return (x + m - 1) // m * m


# ---------------------------------------------------------------------------
# Kernel: LeakyReLU(patch tile) @ W (bf16 MXU, f32 accumulate) + bias.
# Emits the conv output tile (bf16 when BN follows) and per-M-tile f32
# (sum, sum-of-squares) partials so BatchNorm batch statistics can be formed
# across tiles while keeping the M axis "parallel" (megacore friendly).
# ---------------------------------------------------------------------------
def _conv_stats_kernel(p_ref, w_ref, b_ref, y_ref, s_ref, acc_ref):
    k = pl.program_id(2)

    @pl.when(k == 0)
    def _init():
        acc_ref[...] = jnp.zeros_like(acc_ref)

    # LeakyReLU fused on the loaded patch tile; stays bf16 for the MXU.
    # (On v5e this costs extra VALU converts; hoist to the wrapper only if a
    # bundle dump shows VALU saturating — normally hidden under the MXU.)
    p = p_ref[...]
    p = jnp.where(p > 0, p, p * 0.2)
    acc_ref[...] += jnp.dot(p, w_ref[...], preferred_element_type=jnp.float32)

    @pl.when(k == pl.num_programs(2) - 1)
    def _finalize():
        y = acc_ref[...] + b_ref[...]                         # bias applied once, in f32
        y_ref[...] = y.astype(y_ref.dtype)                    # bf16 writeback (halves HBM)
        # Stats rows written directly (no concatenate relayout); tiny masked stores are OK.
        s_ref[0:1, :] = jnp.sum(y, axis=0, keepdims=True)
        s_ref[1:2, :] = jnp.sum(y * y, axis=0, keepdims=True)


# ---------------------------------------------------------------------------
# im2col glue (plain JAX; XLA fuses pad + gather). K axis ordered (c, kh, kw)
# to match PyTorch's weight.reshape(C_out, -1).
# ---------------------------------------------------------------------------
def _im2col(x_pad, kh, kw, stride, oh, ow):
    n, c, _, _ = x_pad.shape
    cols = []
    for ih in range(kh):
        for iw in range(kw):
            cols.append(
                x_pad[:, :, ih:ih + stride * oh:stride, iw:iw + stride * ow:stride]
            )  # (N, C, OH, OW)
    patches = jnp.stack(cols, axis=2)                   # (N, C, KH*KW, OH, OW)
    patches = jnp.transpose(patches, (0, 3, 4, 1, 2))   # (N, OH, OW, C, KH*KW)
    return patches.reshape(n * oh * ow, c * kh * kw)


# ---------------------------------------------------------------------------
# Tile selection (review items 1-3, 9): big tiles, explicit VMEM budget,
# >=2 blocks on the parallel grid axes for v7x megacore.
# ---------------------------------------------------------------------------
def _select_tiles(m_true, k_true, c_out):
    c128 = _round_up(c_out, 128)
    tn = c128 if c128 <= 512 else 256            # full padded C_out when it fits -> nt == 1
    cp = _round_up(c_out, tn)
    nt = cp // tn

    k128 = _round_up(k_true, 128)
    tk = k128 if k128 <= 2048 else 512           # single K block when it fits -> kt == 1
    kp = _round_up(k_true, tk)
    kt = kp // tk

    tm = min(512, _round_up(m_true, 8))
    mp = _round_up(m_true, tm)
    mt = mp // tm

    # v7x has 2 TensorCores sharded over the "parallel" grid axes; a (1,1,kt) grid
    # leaves one idle.  Halve the M tile to get >= 2 parallel blocks when possible.
    if mt * nt < 2 and tm > 8:
        tm = _round_up(max(tm // 2, 8), 8)
        mp = _round_up(m_true, tm)
        mt = mp // tm

    # Explicit double-buffered VMEM budget: 2x(inputs) + 2x(outputs) + scratch.
    # Keep under ~24 MiB so the config tuned on v5e/v6e (128 MiB) does not regress
    # on v7x (64 MiB physical, 32 MiB scoped default).
    def vmem_bytes(tm_):
        return (2 * (tm_ * tk * 2 + tk * tn * 2 + tm_ * tn * 2 + 2 * tn * 4 + tn * 4)
                + tm_ * tn * 4)

    while vmem_bytes(tm) > 24 * 1024 * 1024 and tm > 8:
        tm = _round_up(max(tm // 2, 8), 8)
        mp = _round_up(m_true, tm)
        mt = mp // tm

    return tm, tk, tn, mp, kp, cp, mt, kt, nt


# ---------------------------------------------------------------------------
# Forward wrapper
# ---------------------------------------------------------------------------
def encoder_block_forward(x, params, *, kernel_size=4, stride=2, padding=1, norm=True):
    """x: (N, C_in, H, W) float32 (NCHW, like PyTorch). Returns (N, C_out, OH, OW)."""
    n, c_in, h, w = x.shape
    w_conv = params["conv_w"]            # (C_out, C_in, KH, KW)
    b_conv = params["conv_b"]            # (C_out,)
    c_out = w_conv.shape[0]
    oh = (h + 2 * padding - kernel_size) // stride + 1
    ow = (w + 2 * padding - kernel_size) // stride + 1

    m_true = n * oh * ow
    k_true = c_in * kernel_size * kernel_size
    tm, tk, tn, mp, kp, cp, mt, kt, nt = _select_tiles(m_true, k_true, c_out)

    # Patch extraction directly in bf16 (no f32 MxK blow-up materialized in HBM),
    # followed by a single pad pass to tile multiples.  Raw x: LeakyReLU is fused
    # inside the kernel (LReLU(0)=0, so zero-padded rows/cols stay zero).
    x_pad = jnp.pad(x.astype(jnp.bfloat16),
                    ((0, 0), (0, 0), (padding, padding), (padding, padding)))
    patches = _im2col(x_pad, kernel_size, kernel_size, stride, oh, ow)     # (M, K) bf16
    patches = jnp.pad(patches, ((0, mp - m_true), (0, kp - k_true)))       # (Mp, Kp)

    w_mat = w_conv.reshape(c_out, k_true).T.astype(jnp.bfloat16)           # (K, C_out)
    w_mat = jnp.pad(w_mat, ((0, kp - k_true), (0, cp - c_out)))            # (Kp, Cp)
    b_pad = jnp.pad(b_conv.astype(jnp.float32), (0, cp - c_out))           # (Cp,)

    # bf16 intermediate when BN follows (stats come from the f32 accumulator); the
    # norm=False path keeps f32 since its output is returned directly.
    y_dtype = jnp.bfloat16 if norm else jnp.float32
    y_bytes = 2 if norm else 4

    cost = pl.CostEstimate(
        flops=2 * mp * kp * cp,
        transcendentals=0,
        bytes_accessed=(nt * mp * kp * 2 + kp * cp * 2 + mp * cp * y_bytes
                        + mt * 2 * cp * 4 + cp * 4))

    y_full, stats = pl.pallas_call(
        _conv_stats_kernel,
        out_shape=(jax.ShapeDtypeStruct((mp, cp), y_dtype),
                   jax.ShapeDtypeStruct((mt, 2, cp), jnp.float32)),
        grid_spec=pltpu.PrefetchScalarGridSpec(
            num_scalar_prefetch=0,
            grid=(mt, nt, kt),
            in_specs=[
                pl.BlockSpec((tm, tk), lambda m, n_, k: (m, k)),
                pl.BlockSpec((tk, tn), lambda m, n_, k: (k, n_)),
                pl.BlockSpec((1, tn), lambda m, n_, k: (0, n_)),
            ],
            out_specs=[
                pl.BlockSpec((tm, tn), lambda m, n_, k: (m, n_)),
                pl.BlockSpec((None, 2, tn), lambda m, n_, k: (m, 0, n_)),
            ],
            scratch_shapes=[pltpu.VMEM((tm, tn), jnp.float32)],
        ),
        compiler_params=pltpu.CompilerParams(
            dimension_semantics=("parallel", "parallel", "arbitrary"),
            vmem_limit_bytes=32 * 1024 * 1024),
        cost_estimate=cost,
    )(patches, w_mat, b_pad.reshape(1, cp))

    if not norm:
        out_flat = y_full[:m_true, :c_out]
    else:
        # Batch statistics across all M tiles, corrected exactly for the zero-padded
        # rows (their conv output is exactly the bias, since LReLU(0)=0).
        n_pad_rows = mp - m_true
        s_sum = stats[:, 0, :].sum(axis=0) - n_pad_rows * b_pad
        s_sq = stats[:, 1, :].sum(axis=0) - n_pad_rows * b_pad * b_pad
        mean = (s_sum / m_true)[:c_out]
        var = jnp.maximum((s_sq / m_true)[:c_out] - mean * mean, 0.0)  # biased var (PyTorch)
        gamma = params["bn_gamma"].astype(jnp.float32)
        beta = params["bn_beta"].astype(jnp.float32)
        scale = gamma * jax.lax.rsqrt(var + _BN_EPS)                   # (C_out,)
        shift = beta - mean * scale                                    # (C_out,)
        # BN apply fused by XLA with the slice / reshape / NCHW transpose below:
        # a single read of the bf16 y intermediate + single write of the final layout
        # (drops the previous elementwise kernel and one full HBM pass over y).
        out_flat = y_full[:m_true, :c_out].astype(jnp.float32) * scale + shift

    out = out_flat.reshape(n, oh, ow, c_out)
    return jnp.transpose(out, (0, 3, 1, 2))


# ---------------------------------------------------------------------------
# Deterministic parameter init (mirrors PyTorch default shapes)
# ---------------------------------------------------------------------------
def init_params(key, inplanes, outplanes, kernel_size=4):
    k_w, k_b = jax.random.split(key)
    fan_in = inplanes * kernel_size * kernel_size
    bound = 1.0 / jnp.sqrt(fan_in)
    conv_w = jax.random.uniform(
        k_w, (outplanes, inplanes, kernel_size, kernel_size),
        minval=-bound, maxval=bound, dtype=jnp.float32)
    conv_b = jax.random.uniform(
        k_b, (outplanes,), minval=-bound, maxval=bound, dtype=jnp.float32)
    return {
        "conv_w": conv_w,
        "conv_b": conv_b,
        "bn_gamma": jnp.ones((outplanes,), jnp.float32),
        "bn_beta": jnp.zeros((outplanes,), jnp.float32),
    }


# ---------------------------------------------------------------------------
# Pure-JAX f32 reference for sanity check
# ---------------------------------------------------------------------------
def reference_forward(x, params, *, kernel_size=4, stride=2, padding=1):
    fx = jnp.where(x > 0, x, 0.2 * x)
    y = jax.lax.conv_general_dilated(
        fx, params["conv_w"],
        window_strides=(stride, stride),
        padding=((padding, padding), (padding, padding)),
        dimension_numbers=("NCHW", "OIHW", "NCHW"))
    y = y + params["conv_b"].reshape(1, -1, 1, 1)
    mean = jnp.mean(y, axis=(0, 2, 3), keepdims=True)
    var = jnp.mean((y - mean) ** 2, axis=(0, 2, 3), keepdims=True)
    g = params["bn_gamma"].reshape(1, -1, 1, 1)
    b = params["bn_beta"].reshape(1, -1, 1, 1)
    return g * (y - mean) * jax.lax.rsqrt(var + _BN_EPS) + b


# ---------------------------------------------------------------------------
# Main
# ---------------------------------------------------------------------------
if __name__ == "__main__":
    key = jax.random.PRNGKey(0)
    k_x, k_p = jax.random.split(key)

    N, C_IN, C_OUT, H, W = 2, 4, 8, 16, 16
    x = jax.random.normal(k_x, (N, C_IN, H, W), dtype=jnp.float32)
    params = init_params(k_p, C_IN, C_OUT)

    fwd = jax.jit(encoder_block_forward)
    out = jax.block_until_ready(fwd(x, params))

    ref = jax.block_until_ready(reference_forward(x, params))
    assert out.shape == (N, C_OUT, H // 2, W // 2), out.shape
    max_err = float(jnp.max(jnp.abs(out - ref)))
    # bf16 MXU inputs + bf16 y intermediate -> loosened tolerance vs f32 reference.
    assert max_err < 5e-2, max_err

    print("KERNEL_OK")
</pallas_src>

<mosaic_0001>
module attributes {stable_mosaic.version = 11 : i64} {
  func.func @_conv_stats_kernel(%arg0: i32, %arg1: i32, %arg2: i32, %arg3: memref<64x128xbf16, #tpu.memory_space<vmem>>, %arg4: memref<128x128xbf16, #tpu.memory_space<vmem>>, %arg5: memref<1x128xf32, #tpu.memory_space<vmem>>, %arg6: memref<64x128xbf16, #tpu.memory_space<vmem>>, %arg7: memref<1x2x128xf32, #tpu.memory_space<vmem>>, %arg8: memref<64x128xf32, #tpu.memory_space<vmem>>) attributes {dimension_semantics = [#tpu.dimension_semantics<parallel>, #tpu.dimension_semantics<parallel>, #tpu.dimension_semantics<arbitrary>], iteration_bounds = array<i64: 2, 1, 1>, scalar_prefetch = 0 : i64, scratch_operands = 1 : i64, tpu.core_type = #tpu.core_type<tc>, window_params = [{transform_indices = @transform_0, window_bounds = array<i64: 64, 128>}, {transform_indices = @transform_1, window_bounds = array<i64: 128, 128>}, {transform_indices = @transform_2, window_bounds = array<i64: 1, 128>}, {transform_indices = @transform_3, window_bounds = array<i64: 64, 128>}, {transform_indices = @transform_4, window_bounds = array<i64: 1, 2, 128>}]} {
    %c0_i32 = arith.constant 0 : i32
    %0 = arith.cmpi eq, %arg2, %c0_i32 : i32
    %1 = arith.extui %0 : i1 to i32
    %c0_i32_0 = arith.constant 0 : i32
    %2 = arith.cmpi ne, %1, %c0_i32_0 : i32
    scf.if %2 {
      %cst_12 = arith.constant 0.000000e+00 : f32
      %17 = vector.broadcast %cst_12 : f32 to vector<64x128xf32>
      %c0_13 = arith.constant 0 : index
      %c0_14 = arith.constant 0 : index
      %18 = vector.load %arg8[%c0_13, %c0_14] : memref<64x128xf32, #tpu.memory_space<vmem>>, vector<64x128xf32>
      tpu.vector_store %arg8[%c0_13, %c0_14], %17 {strides = array<i32>} : memref<64x128xf32, #tpu.memory_space<vmem>>, vector<64x128xf32>,
    } else {
    }
    %c0 = arith.constant 0 : index
    %c0_1 = arith.constant 0 : index
    %3 = vector.load %arg3[%c0, %c0_1] : memref<64x128xbf16, #tpu.memory_space<vmem>>, vector<64x128xbf16>
    %cst = arith.constant 0.000000e+00 : bf16
    %4 = vector.broadcast %cst : bf16 to vector<64x128xbf16>
    %5 = arith.cmpf ogt, %3, %4 : vector<64x128xbf16>
    %cst_2 = arith.constant 2.001950e-01 : bf16
    %6 = vector.broadcast %cst_2 : bf16 to vector<64x128xbf16>
    %7 = arith.mulf %3, %6 : vector<64x128xbf16>
    %8 = arith.select %5, %3, %7 : vector<64x128xi1>, vector<64x128xbf16>
    %c0_3 = arith.constant 0 : index
    %c0_4 = arith.constant 0 : index
    %9 = vector.load %arg8[%c0_3, %c0_4] : memref<64x128xf32, #tpu.memory_space<vmem>>, vector<64x128xf32>
    %c0_5 = arith.constant 0 : index
    %c0_6 = arith.constant 0 : index
    %10 = vector.load %arg4[%c0_5, %c0_6] : memref<128x128xbf16, #tpu.memory_space<vmem>>, vector<128x128xbf16>
    %cst_7 = arith.constant dense<0.000000e+00> : vector<64x128xf32>
    %11 = tpu.matmul %8, %10, %cst_7 {dimension_numbers = #tpu.dot_dimension_numbers<[1], [0], [0], [1], [0, 0, 1, 1], [], []>} : vector<64x128xbf16>, vector<128x128xbf16>, vector<64x128xf32> -> vector<64x128xf32>
    %12 = arith.addf %9, %11 : vector<64x128xf32>
    %c0_8 = arith.constant 0 : index
    %c0_9 = arith.constant 0 : index
    %13 = vector.load %arg8[%c0_8, %c0_9] : memref<64x128xf32, #tpu.memory_space<vmem>>, vector<64x128xf32>
    tpu.vector_store %arg8[%c0_8, %c0_9], %12 {strides = array<i32>} : memref<64x128xf32, #tpu.memory_space<vmem>>, vector<64x128xf32>,
    %c0_i32_10 = arith.constant 0 : i32
    %14 = arith.cmpi eq, %arg2, %c0_i32_10 : i32
    %15 = arith.extui %14 : i1 to i32
    %c0_i32_11 = arith.constant 0 : i32
    %16 = arith.cmpi ne, %15, %c0_i32_11 : i32
    scf.if %16 {
      %c0_12 = arith.constant 0 : index
      %c0_13 = arith.constant 0 : index
      %17 = vector.load %arg8[%c0_12, %c0_13] : memref<64x128xf32, #tpu.memory_space<vmem>>, vector<64x128xf32>
      %c0_14 = arith.constant 0 : index
      %c0_15 = arith.constant 0 : index
      %18 = vector.load %arg5[%c0_14, %c0_15] : memref<1x128xf32, #tpu.memory_space<vmem>>, vector<1x128xf32>
      %19 = vector.broadcast %18 : vector<1x128xf32> to vector<64x128xf32>
      %20 = arith.addf %17, %19 : vector<64x128xf32>
      %21 = arith.truncf %20 : vector<64x128xf32> to vector<64x128xbf16>
      %c0_16 = arith.constant 0 : index
      %c0_17 = arith.constant 0 : index
      %22 = vector.load %arg6[%c0_16, %c0_17] : memref<64x128xbf16, #tpu.memory_space<vmem>>, vector<64x128xbf16>
      tpu.vector_store %arg6[%c0_16, %c0_17], %21 {strides = array<i32>} : memref<64x128xbf16, #tpu.memory_space<vmem>>, vector<64x128xbf16>,
      %cst_18 = arith.constant dense<0.000000e+00> : vector<128xf32>
      %23 = vector.multi_reduction <add>, %20, %cst_18 [0] : vector<64x128xf32> to vector<128xf32>
      %24 = vector.shape_cast %23 : vector<128xf32> to vector<1x128xf32>
      %c0_19 = arith.constant 0 : index
      %c0_20 = arith.constant 0 : index
      %c0_21 = arith.constant 0 : index
      %25 = vector.load %arg7[%c0_19, %c0_20, %c0_21] : memref<1x2x128xf32, #tpu.memory_space<vmem>>, vector<1x1x128xf32>
      %26 = vector.shape_cast %25 : vector<1x1x128xf32> to vector<1x128xf32>
      %27 = vector.shape_cast %24 : vector<1x128xf32> to vector<1x1x128xf32>
      tpu.vector_store %arg7[%c0_19, %c0_20, %c0_21], %27 {strides = array<i32>} : memref<1x2x128xf32, #tpu.memory_space<vmem>>, vector<1x1x128xf32>,
      %28 = arith.mulf %20, %20 : vector<64x128xf32>
      %cst_22 = arith.constant dense<0.000000e+00> : vector<128xf32>
      %29 = vector.multi_reduction <add>, %28, %cst_22 [0] : vector<64x128xf32> to vector<128xf32>
      %30 = vector.shape_cast %29 : vector<128xf32> to vector<1x128xf32>
      %c0_23 = arith.constant 0 : index
      %c1 = arith.constant 1 : index
      %c0_24 = arith.constant 0 : index
      %31 = vector.load %arg7[%c0_23, %c1, %c0_24] : memref<1x2x128xf32, #tpu.memory_space<vmem>>, vector<1x1x128xf32>
      %32 = vector.shape_cast %31 : vector<1x1x128xf32> to vector<1x128xf32>
      %33 = vector.shape_cast %30 : vector<1x128xf32> to vector<1x1x128xf32>
      tpu.vector_store %arg7[%c0_23, %c1, %c0_24], %33 {strides = array<i32>} : memref<1x2x128xf32, #tpu.memory_space<vmem>>, vector<1x1x128xf32>,
    } else {
    }
    return
  }
  func.func @transform_0(%arg0: i32, %arg1: i32, %arg2: i32) -> (i32, i32) {
    %c0_i32 = arith.constant 0 : i32
    return %arg0, %arg2 : i32, i32
  }
  func.func @transform_1(%arg0: i32, %arg1: i32, %arg2: i32) -> (i32, i32) {
    %c0_i32 = arith.constant 0 : i32
    return %arg2, %arg1 : i32, i32
  }
  func.func @transform_2(%arg0: i32, %arg1: i32, %arg2: i32) -> (i32, i32) {
    %c0_i32 = arith.constant 0 : i32
    %c0_i32_0 = arith.constant 0 : i32
    return %c0_i32, %arg1 : i32, i32
  }
  func.func @transform_3(%arg0: i32, %arg1: i32, %arg2: i32) -> (i32, i32) {
    %c0_i32 = arith.constant 0 : i32
    return %arg0, %arg1 : i32, i32
  }
  func.func @transform_4(%arg0: i32, %arg1: i32, %arg2: i32) -> (i32, i32, i32) {
    %c0_i32 = arith.constant 0 : i32
    %c0_i32_0 = arith.constant 0 : i32
    return %arg0, %c0_i32, %arg1 : i32, i32, i32
  }
}

</mosaic_0001>

<bundles_post_ra>
// kernel: encoder_block_forward.1
= control target key start
LH: loop header
LB: loop body
LE: loop exit
PB: predicated region body
PF: predicated region fallthrough
CT: control target
= control target key end

     0   :  { %s916_s15 = smov 0   ;;  %s918_s16 = smov 0   ;;  %s1101_s0 = inlined_call_operand.vmem [shape: bf16[128,128], index: 0, kind: input, shape index: {}]   ;;  %s1102_s1 = inlined_call_operand.vmem [shape: bf16[128,128], index: 1, kind: input, shape index: {}]   ;;  %s1103_s2 = inlined_call_operand.vmem [shape: f32[1,128], index: 2, kind: input, shape index: {}]   ;;  %s1104_s3 = inlined_call_operand.vmem [shape: bf16[128,128], index: 3, kind: output, shape index: {0}]   ;;  %s1105_s4 = inlined_call_operand.vmem [shape: f32[2,2,128], index: 4, kind: output, shape index: {1}]  }
   0x1   :  { %s920_s17 = smov 0  }
   0x2 LB: > { %s34_s18 = sadd.s32 1, %s885_s16  ;;  %p747_p0 = scmp.ge.s32.totalorder %s889_s17, 1  ;;  %s889_s17 = sphi %s920_s17, %s15_s17   ;;  %s885_s16 = sphi %s918_s16, %s1123_s16   ;;  %s881_s15 = sphi %s916_s15, %s1122_s15  }
   0x3   : > { %p36_p1 = scmp.ge.s32.totalorder %s34_s18, 2  ;;  %p218_p2 = scmp.lt.s32.totalorder %s889_s17, 3 }
   0x5   : > { %s1125_s18 = smov (%p36_p1, %s34_s18), 0  ;;  %p219_p3 = pnand %p747_p0, %p218_p2 }
   0x6   : > { %s748_s21 = sshll.u32 (!%p219_p3), %s881_s15, 3  ;;  %p298_p5 = scmp.lt.s32.totalorder (!%p219_p3), %s881_s15, 1 }
   0x7   : > { %222 = sbr.rel (%p219_p3) target bundleno = 209 (0xd1), region = 32  ;;  %p269_p4 = scmp.lt.s32.totalorder (!%p219_p3), %s748_s21, 15 }
   0xc   : > { %v794_v0 = vld [vmem:[%s1102_s1 + $0x38] sm:$0xff]  ;;  %v793_v1 = vld [vmem:[%s1102_s1 + $0x30] sm:$0xff]  ;;  %s1127_s21 = smov (!%p269_p4, %s748_s21), 15  ;;  %v792_v2 = vld [vmem:[%s1102_s1 + $0x28] sm:$0xff]  ;;  %s1129_s15 = smov (!%p298_p5, %s881_s15), 1 }
   0xd   : > { %469 = vmatpush.bf16.msra.mxu0 %v794_v0  ;;  %818 = vmatpush.bf16.msra.mxu1 %v794_v0  ;;  %s749_s24 = sshll.u32 %s1127_s21, 2  ;;  %v791_v13 = vld [vmem:[%s1102_s1 + $0x20] sm:$0xff]  ;;  %v790_v26 = vld [vmem:[%s1102_s1 + $0x18] sm:$0xff]  ;;  %v789_v38 = vld [vmem:[%s1102_s1 + $0x10] sm:$0xff]  ;;  %s752_s21 = sshll.u32 %s1129_s15, 1 }
   0xe   : > { %819 = vmatpush.bf16.msra.mxu2 %v794_v0  ;;  %820 = vmatpush.bf16.msra.mxu3 %v794_v0  ;;  %s275_s29 = scalar_lea.vmem %s1101_s0, %s749_s24  ;;  %v788_v48 = vld [vmem:[%s1102_s1 + $0x8] sm:$0xff]  ;;  %v787_v59 = vld [vmem:[%s1102_s1] sm:$0xff]  ;;  %s296_s23 = scalar_lea.vmem %s1104_s3, %s749_s24 }
   0xf   : > { %v954_v3 = vld [vmem:[%s275_s29] sm:$0xf]  ;;  %v956_v4 = vld [vmem:[%s275_s29 + $0x4] sm:$0xf]  ;;  %v958_v5 = vld [vmem:[%s275_s29 + $0x8] sm:$0xf]  ;;  %s304_s26 = scalar_lea.vmem %s1105_s4, %s752_s21 }
  0x10   : > { %v325_v6 = vunpack.c.l.bf16 %v954_v3  ;;  %v961_v7 = vld [vmem:[%s275_s29 + $0xc] sm:$0xf]  ;;  %v963_v8 = vld [vmem:[%s275_s29 + $0x10] sm:$0xf]  ;;  %v965_v9 = vld [vmem:[%s275_s29 + $0x14] sm:$0xf]  ;;  %v326_v10 = vunpack.c.l.bf16 %v956_v4  ;;  %v327_v11 = vunpack.c.l.bf16 %v958_v5 }
  0x11   : > { %470 = vmatpush.bf16.msra.mxu0 %v793_v1  ;;  %821 = vmatpush.bf16.msra.mxu1 %v793_v1  ;;  %v328_v12 = vunpack.c.l.bf16 %v961_v7  ;;  %v329_v15 = vunpack.c.l.bf16 %v963_v8  ;;  %v330_v17 = vunpack.c.l.bf16 %v965_v9  ;;  %v323_v18 = vld [vmem:[%s275_s29 + $0x18] sm:$0xf]  ;;  %v324_v19 = vld [vmem:[%s275_s29 + $0x1c] sm:$0xf] }
  0x12   : > { %822 = vmatpush.bf16.msra.mxu2 %v793_v1  ;;  %823 = vmatpush.bf16.msra.mxu3 %v793_v1  ;;  %vm973_vm0 = vcmp.gt.f32.partialorder %v325_v6, 0.0  ;;  %vm978_vm1 = vcmp.gt.f32.partialorder %v326_v10, 0.0  ;;  %v341_v20 = vmul.f32 0.20019531, %v325_v6  ;;  %vm983_vm2 = vcmp.gt.f32.partialorder %v327_v11, 0.0  ;;  %v866_v6 = vld [vmem:[%s1103_s2] ss:$0 sm:$0xff] }
  0x13   : > { %v342_v22 = vmul.f32 0.20019531, %v326_v10  ;;  %vm357_vm3 = vmpackc.low %vm973_vm0, %vm973_vm0  ;;  %vm990_vm4 = vcmp.gt.f32.partialorder %v328_v12, 0.0  ;;  %v343_v24 = vmul.f32 0.20019531, %v327_v11  ;;  %v344_v25 = vmul.f32 0.20019531, %v328_v12 }
  0x14   : > { %vm358_vm5 = vmpackc.low %vm978_vm1, %vm978_vm1  ;;  %vm1000_vm6 = vcmp.gt.f32.partialorder %v329_v15, 0.0  ;;  %v345_v28 = vmul.f32 0.20019531, %v329_v15  ;;  %v331_v29 = vunpack.c.l.bf16 %v323_v18  ;;  %v332_v30 = vunpack.c.l.bf16 %v324_v19 }
  0x15   : > { %471 = vmatpush.bf16.msra.mxu0 %v792_v2  ;;  %824 = vmatpush.bf16.msra.mxu1 %v792_v2  ;;  %vm359_vm7 = vmpackc.low %vm983_vm2, %vm983_vm2  ;;  %vm1007_vm8 = vcmp.gt.f32.partialorder %v330_v17, 0.0  ;;  %v346_v32 = vmul.f32 0.20019531, %v330_v17  ;;  %v349_v33 = vpack.c.bf16 %v341_v20, %v341_v20  ;;  %v350_v34 = vpack.c.bf16 %v342_v22, %v342_v22 }
  0x16   : > { %825 = vmatpush.bf16.msra.mxu2 %v792_v2  ;;  %826 = vmatpush.bf16.msra.mxu3 %v792_v2  ;;  %vm360_vm9 = vmpackc.low %vm990_vm4, %vm990_vm4  ;;  %vm1017_vm11 = vcmp.gt.f32.partialorder %v331_v29, 0.0  ;;  %vm1021_vm12 = vcmp.gt.f32.partialorder %v332_v30, 0.0  ;;  %v347_v37 = vmul.f32 0.20019531, %v331_v29  ;;  %v351_v39 = vpack.c.bf16 %v343_v24, %v343_v24 }
  0x17   : > { %vm361_vm10 = vmpackc.low %vm1000_vm6, %vm1000_vm6  ;;  %v352_v40 = vpack.c.bf16 %v344_v25, %v344_v25  ;;  %v353_v41 = vpack.c.bf16 %v345_v28, %v345_v28  ;;  %v348_v42 = vmul.f32 0.20019531, %v332_v30  ;;  %v354_v43 = vpack.c.bf16 %v346_v32, %v346_v32 }
  0x18   : > { %vm362_vm13 = vmpackc.low %vm1007_vm8, %vm1007_vm8  ;;  %v355_v44 = vpack.c.bf16 %v347_v37, %v347_v37  ;;  %v365_v46 = vsel %vm357_vm3, %v954_v3, %v349_v33  ;;  %v366_v47 = vsel %vm358_vm5, %v956_v4, %v350_v34  ;;  %v367_v49 = vsel %vm359_vm7, %v958_v5, %v351_v39 }
  0x19   : > { %472 = vmatpush.bf16.msra.mxu0 %v791_v13  ;;  %827 = vmatpush.bf16.msra.mxu1 %v791_v13  ;;  %vm363_vm14 = vmpackc.low %vm1017_vm11, %vm1017_vm11  ;;  %v356_v45 = vpack.c.bf16 %v348_v42, %v348_v42  ;;  %v368_v50 = vsel %vm360_vm9, %v961_v7, %v352_v40  ;;  %v369_v51 = vsel %vm361_vm10, %v963_v8, %v353_v41  ;;  %v405_v55 = vunpack.c.l.b16 %v365_v46 }
  0x1a   : > { %828 = vmatpush.bf16.msra.mxu2 %v791_v13  ;;  %829 = vmatpush.bf16.msra.mxu3 %v791_v13  ;;  %vm364_vm15 = vmpackc.low %vm1021_vm12, %vm1021_vm12  ;;  %v370_v52 = vsel %vm362_vm13, %v965_v9, %v354_v43  ;;  %v371_v53 = vsel %vm363_vm14, %v323_v18, %v355_v44  ;;  %v406_v56 = vunpack.c.l.b16 %v366_v47  ;;  %v407_v57 = vunpack.c.l.b16 %v367_v49 }
  0x1b   : > { %v372_v54 = vsel %vm364_vm15, %v324_v19, %v356_v45  ;;  %v408_v58 = vunpack.c.l.b16 %v368_v50  ;;  %v409_v60 = vunpack.c.l.b16 %v369_v51  ;;  %v410_v61 = vunpack.c.l.b16 %v370_v52 }
  0x1c   : > { %v411_v62 = vunpack.c.l.b16 %v371_v53  ;;  %v412_v63 = vunpack.c.l.b16 %v372_v54  ;;  %v413_v0 = vpack.c.b16 %v406_v56, %v405_v55 }
  0x1d   : > { %473 = vmatpush.bf16.msra.mxu0 %v790_v26  ;;  %830 = vmatpush.bf16.msra.mxu1 %v790_v26  ;;  %v414_v1 = vpack.c.b16 %v408_v58, %v407_v57  ;;  %v415_v2 = vpack.c.b16 %v410_v61, %v409_v60 }
  0x1e   : > { %831 = vmatpush.bf16.msra.mxu2 %v790_v26  ;;  %832 = vmatpush.bf16.msra.mxu3 %v790_v26  ;;  %v416_v3 = vpack.c.b16 %v412_v63, %v411_v62 }
  0x21   : > { %474 = vmatpush.bf16.msra.mxu0 %v789_v38  ;;  %833 = vmatpush.bf16.msra.mxu1 %v789_v38 }
  0x22   : > { %834 = vmatpush.bf16.msra.mxu2 %v789_v38  ;;  %835 = vmatpush.bf16.msra.mxu3 %v789_v38 }
  0x25   : > { %475 = vmatpush.bf16.msra.mxu0 %v788_v48  ;;  %836 = vmatpush.bf16.msra.mxu1 %v788_v48 }
  0x26   : > { %837 = vmatpush.bf16.msra.mxu2 %v788_v48  ;;  %838 = vmatpush.bf16.msra.mxu3 %v788_v48 }
  0x29   : > { %476 = vmatpush.bf16.msra.mxu0 %v787_v59  ;;  %839 = vmatpush.bf16.msra.mxu1 %v787_v59 }
  0x2a   : > { %840 = vmatpush.bf16.msra.mxu2 %v787_v59  ;;  %841 = vmatpush.bf16.msra.mxu3 %v787_v59 }
  0x2c   : > { %477 = vmatmul.bf16.vlgmr.msra.gmra.mxu0 %v413_v0  ;;  %482 = vmatmul.bf16.vlgmr.msra.gmra.mxu1 %v414_v1 }
  0x2d   : > { %487 = vmatmul.bf16.vlgmr.msra.gmra.mxu2 %v415_v2  ;;  %492 = vmatmul.bf16.vlgmr.msra.gmra.mxu3 %v416_v3 }
  0xa9   : > { %v478_v4 = vpop.f32.mrf.mxu0  ;;  %v483_v5 = vpop.f32.mrf.mxu1 }
  0xaa   : > { %v529_v7 = vadd.f32 %v866_v6, %v478_v4  ;;  %v531_v12 = vadd.f32 %v866_v6, %v483_v5 }
  0xac   : > { %v567_v15 = vmul.f32 %v529_v7, %v529_v7  ;;  %v569_v20 = vmul.f32 %v531_v12, %v531_v12 }
  0xb0   : > { %v488_v8 = vpop.f32.mrf.mxu2  ;;  %v493_v9 = vpop.f32.mrf.mxu3 }
  0xb1   : > { %v480_v10 = vpop.f32.mrf.mxu0  ;;  %v485_v11 = vpop.f32.mrf.mxu1  ;;  %v533_v21 = vadd.f32 %v866_v6, %v488_v8  ;;  %v535_v29 = vadd.f32 %v866_v6, %v493_v9 }
  0xb2   : > { %v530_v13 = vadd.f32 %v866_v6, %v480_v10  ;;  %v532_v14 = vadd.f32 %v866_v6, %v485_v11 }
  0xb3   : > { %v571_v32 = vmul.f32 %v533_v21, %v533_v21  ;;  %v573_v40 = vmul.f32 %v535_v29, %v535_v29 }
  0xb4   : > { %v798_v16 = vpack.c.bf16 %v530_v13, %v529_v7  ;;  %v553_v17 = vadd.f32 %v530_v13, %v529_v7  ;;  %v568_v18 = vmul.f32 %v530_v13, %v530_v13  ;;  %v803_v19 = vpack.c.bf16 %v532_v14, %v531_v12 }
  0xb5   : > { %v570_v25 = vmul.f32 %v532_v14, %v532_v14 }
  0xb6   : > { %799 = vst [vmem:[%s296_s23] sm:$0xff] %v798_v16   ;;  %v575_v22 = vadd.f32 %v568_v18, %v567_v15  ;;  %v554_v23 = vadd.f32 %v553_v17, %v531_v12 }
  0xb7   : > { %815 = vst [vmem:[%s296_s23 + $0x8] sm:$0xff] %v803_v19  }
  0xb8   : > { %v555_v24 = vadd.f32 %v554_v23, %v532_v14  ;;  %v576_v26 = vadd.f32 %v575_v22, %v569_v20  ;;  %v490_v27 = vpop.f32.mrf.mxu2  ;;  %v495_v28 = vpop.f32.mrf.mxu3 }
  0xb9   : > { %v534_v30 = vadd.f32 %v866_v6, %v490_v27  ;;  %v536_v31 = vadd.f32 %v866_v6, %v495_v28 }
  0xba   : > { %v577_v33 = vadd.f32 %v576_v26, %v570_v25  ;;  %v556_v34 = vadd.f32 %v555_v24, %v533_v21 }
  0xbb   : > { %v808_v35 = vpack.c.bf16 %v534_v30, %v533_v21  ;;  %v813_v36 = vpack.c.bf16 %v536_v31, %v535_v29  ;;  %v572_v38 = vmul.f32 %v534_v30, %v534_v30  ;;  %v574_v44 = vmul.f32 %v536_v31, %v536_v31 }
  0xbc   : > { %v557_v37 = vadd.f32 %v556_v34, %v534_v30  ;;  %v578_v39 = vadd.f32 %v577_v33, %v571_v32 }
  0xbd   : > { %816 = vst [vmem:[%s296_s23 + $0x10] sm:$0xff] %v808_v35  }
  0xbe   : > { %v579_v41 = vadd.f32 %v578_v39, %v572_v38  ;;  %817 = vst [vmem:[%s296_s23 + $0x18] sm:$0xff] %v813_v36   ;;  %v558_v42 = vadd.f32 %v557_v37, %v535_v29 }
  0xc0   : > { %v559_v43 = vadd.f32 %v558_v42, %v536_v31  ;;  %v580_v45 = vadd.f32 %v579_v41, %v573_v40 }
  0xc2   : > { %v560_v46 = vrot.slane %v559_v43, 4  ;;  %v581_v47 = vadd.f32 %v580_v45, %v574_v44 }
  0xc4   : > { %v561_v48 = vadd.f32 %v560_v46, %v559_v43  ;;  %v582_v49 = vrot.slane %v581_v47, 4 }
  0xc6   : > { %v562_v50 = vrot.slane %v561_v48, 2  ;;  %v583_v51 = vadd.f32 %v582_v49, %v581_v47 }
  0xc8   : > { %v563_v52 = vadd.f32 %v562_v50, %v561_v48  ;;  %v584_v53 = vrot.slane %v583_v51, 2 }
  0xca   : > { %v564_v54 = vrot.slane %v563_v52, 1  ;;  %v585_v55 = vadd.f32 %v584_v53, %v583_v51 }
  0xcc   : > { %v565_v56 = vadd.f32 %v564_v54, %v563_v52  ;;  %v586_v57 = vrot.slane %v585_v55, 1 }
  0xce   : > { %566 = vst [vmem:[%s304_s26] sm:$0x1] %v565_v56  ;;  %v587_v58 = vadd.f32 %v586_v57, %v585_v55 }
  0xd0   : > { %588 = vst [vmem:[%s304_s26 + $0x1] sm:$0x1] %v587_v58 }
  0xd1 PF: > { %s15_s17 = sadd.s32 1, %s889_s17   ;;  %s1122_s15 = smov %s885_s16 }
  0xd2   : > { %p12_p6 = scmp.ge.s32.totalorder %s15_s17, 4   ;;  %s1123_s16 = smov %s1125_s18 }
  0xd4   :  { %14 = sbr.rel (!%p12_p6) target bundleno = 2 (0x2), region = 88 }

</bundles_post_ra>
